<compile_context>
chip_gen: v7x
topology: tpu7x:2x2x1
jax: 0.10.0
libtpu: 0.0.40
codegen_flags: <defaults>
</compile_context>

<pallas_src>
import jax
import jax.numpy as jnp
from jax.experimental import pallas as pl
from jax.experimental.pallas import tpu as pltpu

_LANE = 128


def _round_up(v, m):
    return ((v + m - 1) // m) * m


def _cdiv(a, b):
    return -(-a // b)


def _scaler_kernel(x_ref, w_ref, bias_ref, o_ref):
    # x_ref:    (Nb, Cin, T)   pixel tile covering Nb batch rows
    # w_ref:    (Cout, Cin)    1x1 conv weight with BN scale folded in
    # bias_ref: (Cout, 1)      folded BN bias (f32)
    # o_ref:    (Nb, Cout, T)  lane-dense output tile
    w = w_ref[...]
    b = bias_ref[...]
    for i in range(x_ref.shape[0]):            # static unroll over batch rows
        x = jnp.maximum(x_ref[i], 0)           # F.relu in the input dtype
        y = jnp.dot(w, x.astype(w.dtype),      # 1x1 conv on the MXU
                    preferred_element_type=jnp.float32)
        o_ref[i] = (y + b).astype(o_ref.dtype)


def _chip_params():
    """Generation-aware VMEM budget / scoped limit / bytes-per-step target."""
    vmem_cap = 64 * 1024 * 1024          # conservative default (v7x per-TC)
    try:
        info = pltpu.get_tpu_info()
        vmem_cap = int(getattr(info, "vmem_capacity_bytes", vmem_cap))
    except Exception:
        pass
    vmem_budget = vmem_cap // 2
    vmem_limit = max(min(int(vmem_cap * 0.75), vmem_cap - (8 << 20)), 32 << 20)
    # v7x (~64 MiB VMEM, ~3.2 TB/s HBM) needs ~2x more bytes per grid step than
    # v5e/v6e to keep the ~0.35 us fixed per-step overhead hidden.
    target_bytes = (4 << 20) if vmem_cap <= (64 << 20) else (2 << 20)
    return vmem_budget, vmem_limit, target_bytes


def _choose_tiles(N, HW, Cin, Cout, x_item, w_item, out_item,
                  vmem_budget, target_bytes, min_steps=4, max_nb=8):
    """Pick (batch rows per step, pixel columns per step).

    Policy: reach `target_bytes` of (x + out) HBM traffic per grid step, stay
    inside the VMEM budget (double-buffered blocks + f32 accumulator + cast
    temps), and keep >= min_steps grid steps for megacore when that does not
    drop per-step traffic below the target. Pixel tiles are 128-multiples;
    ragged last blocks are masked by Pallas.
    """
    hw_full = _round_up(HW, _LANE)                   # largest legal pixel tile
    per_col_hbm = Cin * x_item + Cout * out_item     # HBM bytes per column
    # VMEM working set per (batch row, column): 2 x-bufs + 2 out-bufs
    # + f32 accumulator + bf16/cast temp of the x tile.
    per_col_vmem = 2 * Cin * x_item + 2 * Cout * out_item + Cout * 4 + Cin * w_item
    fixed_vmem = 2 * Cout * Cin * w_item + 2 * Cout * 4   # weight + bias blocks

    # 1) Columns (per batch row) needed to hit the bytes-per-step target.
    t_hw = _round_up(max(_LANE, _cdiv(target_bytes, per_col_hbm)), _LANE)
    t_hw = min(t_hw, hw_full)

    # 2) If HW alone can't reach the target, block the batch dimension too.
    nb = 1
    if t_hw >= hw_full and N > 1:
        nb = min(N, max_nb,
                 max(1, _cdiv(target_bytes, hw_full * per_col_hbm)))

    # 3) Shrink until the working set fits the VMEM budget.
    def wset(nb_, t_):
        return nb_ * t_ * per_col_vmem + fixed_vmem

    while nb > 1 and wset(nb, t_hw) > vmem_budget:
        nb -= 1
    while t_hw > _LANE and wset(nb, t_hw) > vmem_budget:
        t_hw -= _LANE

    # 4) Keep >= min_steps grid steps (v7x megacore) when the per-step traffic
    #    stays at/above the target after shrinking.
    def steps(nb_, t_):
        return _cdiv(N, nb_) * _cdiv(HW, t_)

    while (steps(nb, t_hw) < min_steps and nb > 1
           and (nb - 1) * min(t_hw, hw_full) * per_col_hbm >= target_bytes):
        nb -= 1
    while (steps(nb, t_hw) < min_steps and t_hw > _LANE
           and nb * (t_hw - _LANE) * per_col_hbm >= target_bytes):
        t_hw -= _LANE

    return nb, t_hw


def deeplab_scaler_width(x_nchw, conv_w, bn_gamma, bn_beta, bn_mean, bn_var,
                         eps=1e-5, compute_dtype=None, out_dtype=None):
    """x_nchw: (N, Cin, H, W); conv_w: (Cout, Cin) (1x1 kernel squeezed).

    compute_dtype: dtype of the folded weight / MXU operands (e.g. bf16);
    accumulation is always f32. out_dtype defaults to the input dtype
    (pass bf16 if downstream consumers accept it -- cuts output traffic).
    """
    N, Cin, H, W = x_nchw.shape
    Cout = conv_w.shape[0]
    HW = H * W
    if compute_dtype is None:
        compute_dtype = x_nchw.dtype
    if out_dtype is None:
        out_dtype = x_nchw.dtype

    # Fold BN (inference form) into the weight and a per-channel bias (f32).
    scale = bn_gamma.astype(jnp.float32) / jnp.sqrt(
        bn_var.astype(jnp.float32) + eps)                       # (Cout,)
    w_folded = (scale[:, None] * conv_w.astype(jnp.float32)
                ).astype(compute_dtype)                         # (Cout, Cin)
    bias = (bn_beta.astype(jnp.float32)
            - bn_mean.astype(jnp.float32) * scale
            ).reshape(Cout, 1).astype(jnp.float32)              # (Cout, 1)

    # NCHW viewed as (N, Cin, H*W): free reshape, no transpose, no padding.
    x3 = x_nchw.reshape(N, Cin, HW)

    x_item = x_nchw.dtype.itemsize
    w_item = jnp.dtype(compute_dtype).itemsize
    out_item = jnp.dtype(out_dtype).itemsize

    vmem_budget, vmem_limit, target_bytes = _chip_params()
    nb, t_hw = _choose_tiles(N, HW, Cin, Cout, x_item, w_item, out_item,
                             vmem_budget, target_bytes)
    grid_n = pl.cdiv(N, nb)
    grid_hw = pl.cdiv(HW, t_hw)

    cost = pl.CostEstimate(
        flops=2 * N * HW * Cin * Cout,
        transcendentals=0,
        bytes_accessed=(N * HW * (Cin * x_item + Cout * out_item)
                        + Cout * Cin * w_item + Cout * 4))

    out3 = pl.pallas_call(
        _scaler_kernel,
        out_shape=jax.ShapeDtypeStruct((N, Cout, HW), out_dtype),
        grid_spec=pltpu.PrefetchScalarGridSpec(
            num_scalar_prefetch=0,
            grid=(grid_n, grid_hw),
            in_specs=[
                pl.BlockSpec((nb, Cin, t_hw), lambda n, j: (n, 0, j)),   # x
                pl.BlockSpec((Cout, Cin), lambda n, j: (0, 0)),          # weight
                pl.BlockSpec((Cout, 1), lambda n, j: (0, 0)),            # bias
            ],
            out_specs=pl.BlockSpec((nb, Cout, t_hw), lambda n, j: (n, 0, j)),
        ),
        compiler_params=pltpu.CompilerParams(
            dimension_semantics=("parallel", "parallel"),
            vmem_limit_bytes=int(vmem_limit)),
        cost_estimate=cost,
    )(x3, w_folded, bias)

    # (N, Cout, H*W) -> (N, Cout, H, W): free reshape, no transpose.
    return out3.reshape(N, Cout, H, W)


def _reference(x_nchw, conv_w, bn_gamma, bn_beta, bn_mean, bn_var, eps=1e-5):
    # Pure-JAX reference of the same forward pass.
    x = jnp.maximum(x_nchw, 0.0)
    y = jnp.einsum('nchw,oc->nohw', x, conv_w)
    scale = bn_gamma / jnp.sqrt(bn_var + eps)
    bias = bn_beta - bn_mean * scale
    return y * scale[None, :, None, None] + bias[None, :, None, None]


if __name__ == "__main__":
    key = jax.random.PRNGKey(0)
    k_x, k_w, k_g, k_b, k_m, k_v = jax.random.split(key, 6)

    N, Cin, H, W = 2, 4, 16, 16
    Cout = 8

    x = jax.random.normal(k_x, (N, Cin, H, W), dtype=jnp.float32)
    conv_w = jax.random.normal(k_w, (Cout, Cin), dtype=jnp.float32) * 0.1
    bn_gamma = 1.0 + 0.1 * jax.random.normal(k_g, (Cout,), dtype=jnp.float32)
    bn_beta = 0.1 * jax.random.normal(k_b, (Cout,), dtype=jnp.float32)
    bn_mean = 0.1 * jax.random.normal(k_m, (Cout,), dtype=jnp.float32)
    bn_var = jnp.abs(jax.random.normal(k_v, (Cout,), dtype=jnp.float32)) + 0.5

    ref = _reference(x, conv_w, bn_gamma, bn_beta, bn_mean, bn_var)

    # f32 path (tight tolerance vs reference).
    out = deeplab_scaler_width(x, conv_w, bn_gamma, bn_beta, bn_mean, bn_var)
    out = jax.block_until_ready(out)
    assert out.shape == (N, Cout, H, W)
    assert jnp.allclose(out, ref, atol=1e-4, rtol=1e-4), "f32 mismatch vs reference"

    # bf16-weight compute path (MXU in bf16, f32 accumulate) — looser tolerance.
    out_bf16 = deeplab_scaler_width(x, conv_w, bn_gamma, bn_beta, bn_mean,
                                    bn_var, compute_dtype=jnp.bfloat16)
    out_bf16 = jax.block_until_ready(out_bf16)
    assert jnp.allclose(out_bf16.astype(jnp.float32), ref,
                        atol=5e-2, rtol=5e-2), "bf16 mismatch vs reference"

    print("KERNEL_OK")
</pallas_src>

<mosaic_0001>
module attributes {stable_mosaic.version = 11 : i64} {
  func.func @_scaler_kernel(%arg0: i32, %arg1: i32, %arg2: memref<2x4x256xf32, #tpu.memory_space<vmem>>, %arg3: memref<8x4xf32, #tpu.memory_space<vmem>>, %arg4: memref<8x1xf32, #tpu.memory_space<vmem>>, %arg5: memref<2x8x256xf32, #tpu.memory_space<vmem>>) attributes {dimension_semantics = [#tpu.dimension_semantics<parallel>, #tpu.dimension_semantics<parallel>], iteration_bounds = array<i64: 1, 1>, scalar_prefetch = 0 : i64, scratch_operands = 0 : i64, tpu.core_type = #tpu.core_type<tc>, window_params = [{transform_indices = @transform_0, window_bounds = array<i64: 2, 4, 256>}, {pipeline_mode = #tpu.pipeline_mode<synchronous>, transform_indices = @transform_1, window_bounds = array<i64: 8, 4>}, {pipeline_mode = #tpu.pipeline_mode<synchronous>, transform_indices = @transform_2, window_bounds = array<i64: 8, 1>}, {transform_indices = @transform_3, window_bounds = array<i64: 2, 8, 256>}]} {
    %c0 = arith.constant 0 : index
    %c0_0 = arith.constant 0 : index
    %0 = vector.load %arg3[%c0, %c0_0] : memref<8x4xf32, #tpu.memory_space<vmem>>, vector<8x4xf32>
    %c0_1 = arith.constant 0 : index
    %c0_2 = arith.constant 0 : index
    %1 = vector.load %arg4[%c0_1, %c0_2] : memref<8x1xf32, #tpu.memory_space<vmem>>, vector<8x1xf32>
    %c0_3 = arith.constant 0 : index
    %c0_4 = arith.constant 0 : index
    %c0_5 = arith.constant 0 : index
    %2 = vector.load %arg2[%c0_3, %c0_4, %c0_5] : memref<2x4x256xf32, #tpu.memory_space<vmem>>, vector<1x4x256xf32>
    %3 = vector.shape_cast %2 : vector<1x4x256xf32> to vector<4x256xf32>
    %cst = arith.constant 0.000000e+00 : f32
    %4 = vector.broadcast %cst : f32 to vector<4x256xf32>
    %5 = arith.maximumf %3, %4 : vector<4x256xf32>
    %cst_6 = arith.constant dense<0.000000e+00> : vector<8x256xf32>
    %6 = tpu.matmul %0, %5, %cst_6 {dimension_numbers = #tpu.dot_dimension_numbers<[1], [0], [0], [1], [0, 0, 1, 1], [], []>} : vector<8x4xf32>, vector<4x256xf32>, vector<8x256xf32> -> vector<8x256xf32>
    %7 = vector.broadcast %1 : vector<8x1xf32> to vector<8x256xf32>
    %8 = arith.addf %6, %7 : vector<8x256xf32>
    %c0_7 = arith.constant 0 : index
    %c0_8 = arith.constant 0 : index
    %c0_9 = arith.constant 0 : index
    %9 = vector.load %arg5[%c0_7, %c0_8, %c0_9] : memref<2x8x256xf32, #tpu.memory_space<vmem>>, vector<1x8x256xf32>
    %10 = vector.shape_cast %9 : vector<1x8x256xf32> to vector<8x256xf32>
    %11 = vector.shape_cast %8 : vector<8x256xf32> to vector<1x8x256xf32>
    tpu.vector_store %arg5[%c0_7, %c0_8, %c0_9], %11 {strides = array<i32>} : memref<2x8x256xf32, #tpu.memory_space<vmem>>, vector<1x8x256xf32>,
    %c1 = arith.constant 1 : index
    %c0_10 = arith.constant 0 : index
    %c0_11 = arith.constant 0 : index
    %12 = vector.load %arg2[%c1, %c0_10, %c0_11] : memref<2x4x256xf32, #tpu.memory_space<vmem>>, vector<1x4x256xf32>
    %13 = vector.shape_cast %12 : vector<1x4x256xf32> to vector<4x256xf32>
    %cst_12 = arith.constant 0.000000e+00 : f32
    %14 = vector.broadcast %cst_12 : f32 to vector<4x256xf32>
    %15 = arith.maximumf %13, %14 : vector<4x256xf32>
    %cst_13 = arith.constant dense<0.000000e+00> : vector<8x256xf32>
    %16 = tpu.matmul %0, %15, %cst_13 {dimension_numbers = #tpu.dot_dimension_numbers<[1], [0], [0], [1], [0, 0, 1, 1], [], []>} : vector<8x4xf32>, vector<4x256xf32>, vector<8x256xf32> -> vector<8x256xf32>
    %17 = vector.broadcast %1 : vector<8x1xf32> to vector<8x256xf32>
    %18 = arith.addf %16, %17 : vector<8x256xf32>
    %c1_14 = arith.constant 1 : index
    %c0_15 = arith.constant 0 : index
    %c0_16 = arith.constant 0 : index
    %19 = vector.load %arg5[%c1_14, %c0_15, %c0_16] : memref<2x8x256xf32, #tpu.memory_space<vmem>>, vector<1x8x256xf32>
    %20 = vector.shape_cast %19 : vector<1x8x256xf32> to vector<8x256xf32>
    %21 = vector.shape_cast %18 : vector<8x256xf32> to vector<1x8x256xf32>
    tpu.vector_store %arg5[%c1_14, %c0_15, %c0_16], %21 {strides = array<i32>} : memref<2x8x256xf32, #tpu.memory_space<vmem>>, vector<1x8x256xf32>,
    return
  }
  func.func @transform_0(%arg0: i32, %arg1: i32) -> (i32, i32, i32) {
    %c0_i32 = arith.constant 0 : i32
    %c0_i32_0 = arith.constant 0 : i32
    return %arg0, %c0_i32, %arg1 : i32, i32, i32
  }
  func.func @transform_1(%arg0: i32, %arg1: i32) -> (i32, i32) {
    %c0_i32 = arith.constant 0 : i32
    %c0_i32_0 = arith.constant 0 : i32
    %c0_i32_1 = arith.constant 0 : i32
    return %c0_i32, %c0_i32_0 : i32, i32
  }
  func.func @transform_2(%arg0: i32, %arg1: i32) -> (i32, i32) {
    %c0_i32 = arith.constant 0 : i32
    %c0_i32_0 = arith.constant 0 : i32
    %c0_i32_1 = arith.constant 0 : i32
    return %c0_i32, %c0_i32_0 : i32, i32
  }
  func.func @transform_3(%arg0: i32, %arg1: i32) -> (i32, i32, i32) {
    %c0_i32 = arith.constant 0 : i32
    %c0_i32_0 = arith.constant 0 : i32
    return %arg0, %c0_i32, %arg1 : i32, i32, i32
  }
}

</mosaic_0001>

<bundles_post_ra>
// kernel: tpu_custom_call.1
= control target key start
LH: loop header
LB: loop body
LE: loop exit
PB: predicated region body
PF: predicated region fallthrough
CT: control target
= control target key end

     0   :  { %v244_v4 = vmov 0.0   ;;  %s293_s0 = inlined_call_operand.vmem [shape: f32[2,4,256], index: 0, kind: input, shape index: {}]   ;;  %s294_s1 = inlined_call_operand.vmem [shape: f32[8,4], index: 1, kind: input, shape index: {}]   ;;  %s295_s2 = inlined_call_operand.vmem [shape: f32[8,1], index: 2, kind: input, shape index: {}]   ;;  %s296_s3 = inlined_call_operand.hbm [shape: f32[2,8,256], index: 3, kind: output, shape index: {}]  }
   0x1   :  { %v17_v0 = vld [vmem:[%s293_s0] sm:$0xff]  ;;  %v210_v1 = vld [vmem:[%s293_s0 + $0x8] sm:$0xff]  ;;  %99 = vmatprep.mubr.f32.mxu0 %v244_v4  ;;  %181 = vmatprep.mubr.f32.mxu1 %v244_v4 }
   0x2   :  { %v18_v2 = vmax.f32 %v17_v0, 0.0  ;;  %v110_v3 = vmax.f32 %v210_v1, 0.0  ;;  %v16_v5 = vld [vmem:[%s295_s2] sm:$0xff] }
   0x3   :  { %8 = vsyncpa [#allocation3], 0  ;;  %vm30_vm0 = vcmask 1043456   ;;  %v245_v6 = vmov 0   ;;  %v15_v9 = vld [vmem:[%s294_s1] sm:$0xff]  ;;  %vm26_vm1 = vcmask 31744  }
   0x4   :  { %219 = vset.pattern.permute.xlu0 %v245_v6  ;;  %v25_v7 = vcombine.high %v18_v2, %v18_v2  ;;  %v112_v8 = vcombine.high %v110_v3, %v110_v3  ;;  %s246_s0 = smov [#allocation2]  }
   0x5   :  { %21 = vperm.xlu0 %219, %v16_v5   ;;  %s196_s2 = sshll.u32 %s246_s0, 4  ;;  %s197_s2 = int_to_ptr.vmem [resolvable:$true] %s196_s2 }
   0x6   :  { %207 = vmatprep.subr.msk.mxu0 %vm30_vm0, %v25_v7  ;;  %211 = vmatprep.subr.msk.mxu1 %vm30_vm0, %v112_v8  ;;  %s220_s1 = scalar_lea.vmem %s197_s2, 512  ;;  %p225_p1 = scmp.lt.s32.totalorder %s197_s2, %s197_s2 }
   0x7   :  { %208 = vmatpush1.msk.msra.mxu0 %vm30_vm0, %v18_v2  ;;  %212 = vmatpush1.msk.msra.mxu1 %vm30_vm0, %v110_v3  ;;  %p221_p0 = scmp.ne.s32.totalorder %s197_s2, %s220_s1  ;;  %p226_p2 = scmp.lt.s32.totalorder %s220_s1, %s220_s1 }
   0x8   :  { %209 = vmatmul.mubr.msk.f32.vlgmr.msra.gmra.mrb[0].mxu0 %vm26_vm1, %v15_v9  ;;  %213 = vmatmul.mubr.msk.f32.vlgmr.msra.gmra.mrb[0].mxu1 %vm26_vm1, %v15_v9 }
   0x9   :  { %p227_p3 = por %p226_p2, %p225_p1 }
   0xb   :  { %p228_p4 = pnand %p227_p3, %p221_p0 }
  0x84   :  { %v22_v10 = vpop.permute.xlu0 %21 }
  0xdb   :  { %v101_v11 = vpop.f32.mrb[0].mxu0  ;;  %v183_v12 = vpop.f32.mrb[0].mxu1 }
  0xdc   :  { %v102_v13 = vadd.f32 %v101_v11, %v22_v10  ;;  %v184_v14 = vadd.f32 %v183_v12, %v22_v10  ;;  %v103_v15 = vpop.f32.mrb[1].mxu0  ;;  %v185_v16 = vpop.f32.mrb[1].mxu1 }
  0xdd   :  { %v104_v17 = vadd.f32 %v103_v15, %v22_v10  ;;  %v186_v18 = vadd.f32 %v185_v16, %v22_v10 }
  0xde   :  { %106 = vst [vmem:[#allocation2] sm:$0xff] %v102_v13  ;;  %189 = vst [vmem:[#allocation2 + $0x10] sm:$0xff] %v184_v14 }
  0xdf   :  { %107 = vst [vmem:[#allocation2 + $0x8] sm:$0xff] %v104_v17  ;;  %190 = vst [vmem:[#allocation2 + $0x18] sm:$0xff] %v186_v18 }
  0xe0   :  { %231 = shalt.err (!%p228_p4)
}
  0xe1   :  { %s232_s22 = scalar_lea.hbm %s296_s3, 512 }
  0xe2   :  { %p233_p5 = scmp.ne.s32.totalorder %s296_s3, %s232_s22  ;;  %p236_p6 = scmp.lt.u32.totalorder %s232_s22, %s296_s3 }
  0xe4   :  { %p238_p7 = pnand %p236_p6, %p233_p5 }
  0xe6   :  { %241 = shalt.err (!%p238_p7)
}
  0xe7   :  { %s247_s27 = smov 256   ;;  %s248_s28 = smov 16  }
  0xe8   :  { %202 = dma.vmem_to_hbm [thread:$0]  %s197_s2, 512, %s296_s3, [#allocation3], %s247_s27, %s247_s27, %s248_s28  }
  0xe9   :  { %242 = dma.done.wait [#allocation3], 512  }
  0xea   :  { %243 = vsyncadd [#allocation3], 4294966784 }
  0xeb   :  { %206 = vsyncpa [#allocation3], 1 }

</bundles_post_ra>
